<compile_context>
chip_gen: v7x
topology: tpu7x:2x2x1
jax: 0.10.0
libtpu: 0.0.40
codegen_flags: <defaults>
</compile_context>

<pallas_src>
import jax
import jax.numpy as jnp
from jax.experimental import pallas as pl
from jax.experimental.pallas import tpu as pltpu

state_dim = 10
Attention_in_features = state_dim          # D = 10
Attention_hidden_features = 32             # H = 32


def attention_kernel(s_ref, g_ref, w_ref, o_ref):
    """One (batch-tile, query-row-tile) grid step.

    s_ref: (TB, N, D) f32      g_ref: (TB, TN, N) any dtype (cast in-kernel)
    w_ref: (D, 2H)    f32      o_ref: (TB, TN, N) f32
    """
    tb, n, d = s_ref.shape
    tn = o_ref.shape[1]
    h = w_ref.shape[1] // 2

    s = s_ref[...]                                        # (TB, N, D)

    # Single fused projection against the packed [Wq | Wk] slab.
    w_b = jnp.broadcast_to(w_ref[...], (tb, d, 2 * h))
    qk = jnp.einsum('bnd,bdh->bnh', s, w_b,
                    preferred_element_type=jnp.float32)   # (TB, N, 2H)
    k = qk[:, :, h:]                                      # (TB, N, H)
    q_full = qk[:, :, :h]                                 # (TB, N, H)

    if tn == n:
        # Single row tile: use all query rows.
        q = q_full
    else:
        # Row-tiled path for large N: pick this step's TN query rows.
        # (k is recomputed per row tile; the extra flops are ~D/TN of the
        #  logits matmul, i.e. negligible, and it keeps both axes parallel.)
        row0 = pl.multiple_of(pl.program_id(1) * tn, 8)
        q = jax.lax.dynamic_slice_in_dim(q_full, row0, tn, axis=1)

    logits = jnp.einsum('bqh,bkh->bqk', q, k,
                        preferred_element_type=jnp.float32)  # (TB, TN, N)
    att = logits * logits * g_ref[...].astype(jnp.float32)
    denom = jnp.sum(att, axis=2, keepdims=True) + 0.001       # lane-axis reduce
    o_ref[...] = (att * pl.reciprocal(denom, approx=False)).astype(o_ref.dtype)


def _plan_tiles(B, N, D, gmat_itemsize):
    """Choose (TB, TN): big enough blocks to amortize per-step overhead,
    small enough that the double-buffered working set fits VMEM (v7x: 64 MiB
    physical)."""
    # Query-row tile: full N for moderate N, otherwise a multiple of 8 that
    # divides N (keeps the last dim full-N for lane-dense stores / lane reduce).
    if N <= 512:
        TN = N
    else:
        TN = N  # TODO(synk): non-power-of-two large N falls back to full rows.
        for cand in (512, 256, 128, 64, 32, 16, 8):
            if N % cand == 0:
                TN = cand
                break

    out_blk = TN * N * 4                    # f32 output block, per batch elem
    g_blk = TN * N * gmat_itemsize
    s_blk = N * D * 4
    # double-buffered inputs/outputs + ~5 output-sized f32 temporaries
    per_b = 2 * (s_blk + g_blk) + 2 * out_blk + 5 * out_blk

    budget = 40 << 20                       # leave headroom under v7x 64 MiB
    tb_vmem = max(1, budget // max(per_b, 1))
    tb_target = max(1, (2 << 20) // max(out_blk, 1))   # ~2 MiB output blocks
    TB = int(max(1, min(tb_vmem, tb_target, B)))
    # Ensure >= 2 grid steps when B >= 2 so v7x's two TensorCores both work.
    if B >= 2 and B // TB < 2:
        TB = max(1, B // 2)
    return TB, TN


def attention_forward(s, Gmat, Qweight, Kweight):
    """s: (B, N, D), Gmat: (B, N, N) (any dtype, e.g. bf16/int8 0-1 mask),
    Qweight/Kweight: (D, H).  Returns (B, N, N) float32."""
    B, N, D = s.shape
    H = Qweight.shape[1]

    s = s.astype(jnp.float32)
    # Packed parameter slab -> one DMA, one fused projection matmul.
    w = jnp.concatenate((Qweight, Kweight), axis=1).astype(jnp.float32)  # (D,2H)

    TB, TN = _plan_tiles(B, N, D, Gmat.dtype.itemsize)

    # Pad batch to a multiple of TB (zero rows normalize to 0 and are sliced off).
    Bp = ((B + TB - 1) // TB) * TB
    if Bp != B:
        pad = Bp - B
        s = jnp.pad(s, ((0, pad), (0, 0), (0, 0)))
        Gmat = jnp.pad(Gmat, ((0, pad), (0, 0), (0, 0)))

    grid = (Bp // TB, N // TN)

    # Explicit VMEM budget (default scoped limit is only 16/32 MiB).
    out_blk = TB * TN * N * 4
    g_blk = TB * TN * N * Gmat.dtype.itemsize
    s_blk = TB * N * D * 4
    w_blk = D * 2 * H * 4
    vmem_est = 2 * (s_blk + g_blk + w_blk) + 7 * out_blk + (2 << 20)
    vmem_limit = int(min(max(vmem_est, 32 << 20), 56 << 20))

    flops = int(2 * Bp * N * D * 2 * H      # fused projection
                + 2 * Bp * N * N * H        # logits
                + 3 * Bp * N * N)           # square, mask, normalize
    bytes_accessed = int(s.size * 4 + Gmat.size * Gmat.dtype.itemsize
                         + w.size * 4 + Bp * N * N * 4)

    out = pl.pallas_call(
        attention_kernel,
        out_shape=jax.ShapeDtypeStruct((Bp, N, N), jnp.float32),
        grid=grid,
        in_specs=[
            pl.BlockSpec((TB, N, D), lambda i, j: (i, 0, 0)),    # s (full rows)
            pl.BlockSpec((TB, TN, N), lambda i, j: (i, j, 0)),   # Gmat row tile
            pl.BlockSpec((D, 2 * H), lambda i, j: (0, 0)),       # packed weights
        ],
        out_specs=pl.BlockSpec((TB, TN, N), lambda i, j: (i, j, 0)),
        compiler_params=pltpu.CompilerParams(
            dimension_semantics=("parallel", "parallel"),
            vmem_limit_bytes=vmem_limit),
        cost_estimate=pl.CostEstimate(flops=flops, transcendentals=0,
                                      bytes_accessed=bytes_accessed),
    )(s, Gmat, w)

    return out[:B]


def init_params(key):
    """Match PyTorch init: rand(D,H) * (4/D)**0.5 - (1/D)**0.5."""
    D, H = Attention_in_features, Attention_hidden_features
    kq, kk = jax.random.split(key)
    scale = (4.0 / D) ** 0.5
    shift = (1.0 / D) ** 0.5
    Qw = jax.random.uniform(kq, (D, H), jnp.float32) * scale - shift
    Kw = jax.random.uniform(kk, (D, H), jnp.float32) * scale - shift
    return Qw, Kw


if __name__ == "__main__":
    key = jax.random.PRNGKey(0)
    kp, ks_, kg = jax.random.split(key, 3)

    B, N = 2, 12
    D, H = Attention_in_features, Attention_hidden_features

    Qw, Kw = init_params(kp)
    s = jax.random.normal(ks_, (B, N, D), jnp.float32)

    # 0/1 adjacency-style mask.  Stream it to the kernel in bf16 (exact for
    # 0/1 values, halves the dominant HBM read of this mem-bound kernel).
    Gmat_f32 = (jax.random.uniform(kg, (B, N, N)) > 0.3).astype(jnp.float32)
    Gmat_bf16 = Gmat_f32.astype(jnp.bfloat16)

    out = attention_forward(s, Gmat_bf16, Qw, Kw)
    jax.block_until_ready(out)
    assert out.shape == (B, N, N), out.shape

    # Pure-JAX reference (mirrors the PyTorch forward, f32 throughout).
    def ref(s, Gmat, Qw, Kw):
        q = jnp.einsum('ijk,km->ijm', s, Qw)
        k = jnp.einsum('ijk,km->ijm', s, Kw)
        att = jnp.square(jnp.einsum('bnm,bpm->bnp', q, k)) * Gmat
        return att / (jnp.sum(att, axis=2, keepdims=True) + 0.001)

    ref_out = ref(s, Gmat_f32, Qw, Kw)
    assert jnp.allclose(out, ref_out, atol=1e-5, rtol=1e-5), (
        float(jnp.max(jnp.abs(out - ref_out))))

    print("KERNEL_OK")
</pallas_src>

<mosaic_0001>
module attributes {stable_mosaic.version = 11 : i64} {
  func.func @attention_kernel(%arg0: i32, %arg1: i32, %arg2: memref<1x12x10xf32, #tpu.memory_space<vmem>>, %arg3: memref<1x12x12xbf16, #tpu.memory_space<vmem>>, %arg4: memref<10x64xf32, #tpu.memory_space<vmem>>, %arg5: memref<1x12x12xf32, #tpu.memory_space<vmem>>) attributes {dimension_semantics = [#tpu.dimension_semantics<parallel>, #tpu.dimension_semantics<parallel>], iteration_bounds = array<i64: 2, 1>, scalar_prefetch = 0 : i64, scratch_operands = 0 : i64, tpu.core_type = #tpu.core_type<tc>, window_params = [{transform_indices = @transform_0, window_bounds = array<i64: 1, 12, 10>}, {transform_indices = @transform_1, window_bounds = array<i64: 1, 12, 12>}, {pipeline_mode = #tpu.pipeline_mode<synchronous>, transform_indices = @transform_2, window_bounds = array<i64: 10, 64>}, {transform_indices = @transform_3, window_bounds = array<i64: 1, 12, 12>}]} {
    %c0 = arith.constant 0 : index
    %c0_0 = arith.constant 0 : index
    %c0_1 = arith.constant 0 : index
    %0 = vector.load %arg2[%c0, %c0_0, %c0_1] : memref<1x12x10xf32, #tpu.memory_space<vmem>>, vector<1x12x10xf32>
    %c0_2 = arith.constant 0 : index
    %c0_3 = arith.constant 0 : index
    %1 = vector.load %arg4[%c0_2, %c0_3] : memref<10x64xf32, #tpu.memory_space<vmem>>, vector<10x64xf32>
    %2 = vector.shape_cast %1 : vector<10x64xf32> to vector<1x10x64xf32>
    "tpu.trace_start"() <{level = 10 : i32, message = "bnd,bdh->bnh"}> : () -> ()
    %cst = arith.constant dense<0.000000e+00> : vector<1x12x64xf32>
    %3 = tpu.matmul %0, %2, %cst {dimension_numbers = #tpu.dot_dimension_numbers<[2], [1], [1], [2], [0, 0, 0, 1, 1, 2], [0], [0]>} : vector<1x12x10xf32>, vector<1x10x64xf32>, vector<1x12x64xf32> -> vector<1x12x64xf32>
    "tpu.trace_stop"() : () -> ()
    %4 = vector.extract_strided_slice %3 {offsets = [0, 0, 32], sizes = [1, 12, 32], strides = [1, 1, 1]} : vector<1x12x64xf32> to vector<1x12x32xf32>
    %5 = vector.extract_strided_slice %3 {offsets = [0, 0, 0], sizes = [1, 12, 32], strides = [1, 1, 1]} : vector<1x12x64xf32> to vector<1x12x32xf32>
    "tpu.trace_start"() <{level = 10 : i32, message = "bqh,bkh->bqk"}> : () -> ()
    %cst_4 = arith.constant dense<0.000000e+00> : vector<1x12x12xf32>
    %6 = tpu.matmul %5, %4, %cst_4 {dimension_numbers = #tpu.dot_dimension_numbers<[2], [2], [1], [1], [0, 0, 0, 1, 1, 1], [0], [0]>} : vector<1x12x32xf32>, vector<1x12x32xf32>, vector<1x12x12xf32> -> vector<1x12x12xf32>
    "tpu.trace_stop"() : () -> ()
    %7 = arith.mulf %6, %6 : vector<1x12x12xf32>
    %c0_5 = arith.constant 0 : index
    %c0_6 = arith.constant 0 : index
    %c0_7 = arith.constant 0 : index
    %8 = vector.load %arg3[%c0_5, %c0_6, %c0_7] : memref<1x12x12xbf16, #tpu.memory_space<vmem>>, vector<1x12x12xbf16>
    %9 = arith.extf %8 : vector<1x12x12xbf16> to vector<1x12x12xf32>
    %10 = arith.mulf %7, %9 : vector<1x12x12xf32>
    %cst_8 = arith.constant dense<0.000000e+00> : vector<1x12xf32>
    %11 = vector.multi_reduction <add>, %10, %cst_8 [2] : vector<1x12x12xf32> to vector<1x12xf32>
    %12 = vector.shape_cast %11 : vector<1x12xf32> to vector<1x12x1xf32>
    %cst_9 = arith.constant 1.000000e-03 : f32
    %13 = vector.broadcast %cst_9 : f32 to vector<1x12x1xf32>
    %14 = arith.addf %12, %13 : vector<1x12x1xf32>
    %15 = tpu.reciprocal %14 : vector<1x12x1xf32> -> vector<1x12x1xf32>
    %16 = vector.broadcast %15 : vector<1x12x1xf32> to vector<1x12x12xf32>
    %17 = arith.mulf %10, %16 : vector<1x12x12xf32>
    %c0_10 = arith.constant 0 : index
    %c0_11 = arith.constant 0 : index
    %c0_12 = arith.constant 0 : index
    %18 = vector.load %arg5[%c0_10, %c0_11, %c0_12] : memref<1x12x12xf32, #tpu.memory_space<vmem>>, vector<1x12x12xf32>
    tpu.vector_store %arg5[%c0_10, %c0_11, %c0_12], %17 {strides = array<i32>} : memref<1x12x12xf32, #tpu.memory_space<vmem>>, vector<1x12x12xf32>,
    return
  }
  func.func @transform_0(%arg0: i32, %arg1: i32) -> (i32, i32, i32) {
    %c0_i32 = arith.constant 0 : i32
    %c0_i32_0 = arith.constant 0 : i32
    %c0_i32_1 = arith.constant 0 : i32
    return %arg0, %c0_i32, %c0_i32_0 : i32, i32, i32
  }
  func.func @transform_1(%arg0: i32, %arg1: i32) -> (i32, i32, i32) {
    %c0_i32 = arith.constant 0 : i32
    %c0_i32_0 = arith.constant 0 : i32
    return %arg0, %arg1, %c0_i32 : i32, i32, i32
  }
  func.func @transform_2(%arg0: i32, %arg1: i32) -> (i32, i32) {
    %c0_i32 = arith.constant 0 : i32
    %c0_i32_0 = arith.constant 0 : i32
    %c0_i32_1 = arith.constant 0 : i32
    return %c0_i32, %c0_i32_0 : i32, i32
  }
  func.func @transform_3(%arg0: i32, %arg1: i32) -> (i32, i32, i32) {
    %c0_i32 = arith.constant 0 : i32
    %c0_i32_0 = arith.constant 0 : i32
    return %arg0, %arg1, %c0_i32 : i32, i32, i32
  }
}

</mosaic_0001>

<bundles_post_ra>
// kernel: tpu_custom_call.1
= control target key start
LH: loop header
LB: loop body
LE: loop exit
PB: predicated region body
PF: predicated region fallthrough
CT: control target
= control target key end

     0   :  { %s671_s12 = smov 0   ;;  %s673_s13 = smov 0   ;;  %s725_s0 = inlined_call_operand.vmem [shape: f32[2,12,10], index: 0, kind: input, shape index: {}]   ;;  %s726_s1 = inlined_call_operand.vmem [shape: bf16[2,12,12], index: 1, kind: input, shape index: {}]   ;;  %s727_s2 = inlined_call_operand.vmem [shape: f32[10,64], index: 2, kind: input, shape index: {}]   ;;  %s728_s3 = inlined_call_operand.vmem [shape: f32[2,12,12], index: 3, kind: output, shape index: {}]  }
   0x1   :  { %s675_s14 = smov 0  }
   0x2 LB: > { %s25_s15 = sadd.s32 1, %s643_s13  ;;  %p537_p0 = scmp.ge.s32.totalorder %s647_s14, 1  ;;  %s647_s14 = sphi %s675_s14, %s13_s14   ;;  %s643_s13 = sphi %s673_s13, %s730_s13   ;;  %s639_s12 = sphi %s671_s12, %s729_s12  }
   0x3   : > { %p27_p1 = scmp.ge.s32.totalorder %s25_s15, 2  ;;  %p168_p2 = scmp.lt.s32.totalorder %s647_s14, 3 }
   0x5   : > { %s732_s15 = smov (%p27_p1, %s25_s15), 0  ;;  %p169_p3 = pnand %p537_p0, %p168_p2 }
   0x6   : > { %v232_v0 = vld [vmem:[%s727_s2] sm:$0xff] (!%p169_p3)  ;;  %v233_v1 = vld [vmem:[%s727_s2 + $0x8] sm:$0x3] (!%p169_p3)  ;;  %vm241_vm0 = vcmask (!%p169_p3), 1041408   ;;  %p205_p4 = scmp.lt.s32.totalorder (!%p169_p3), %s639_s12, 1  ;;  %vm649_vm1 = vmmov (!%p169_p3), 1  }
   0x7   : > { %172 = sbr.rel (%p169_p3) target bundleno = 737 (0x2e1), region = 32  ;;  %v578_v2 = vpack.c.bf16 (!%p169_p3), %v233_v1, %v232_v0  ;;  %vm579_vm2 = vmpackc.low (!%p169_p3), %vm241_vm0, %vm649_vm1  ;;  %vm234_vm3 = vcmask (!%p169_p3), 80896   ;;  %vm326_vm4 = vcmask (!%p169_p3), 261120   ;;  %s650_s24 = smov (!%p169_p3), 96   ;;  %vm422_vm6 = vcmask (!%p169_p3), 93184  }
   0x8   : > { %vm585_vm5 = vmpackc.low (!%p169_p3), %vm326_vm4, %vm326_vm4  ;;  %vm418_vm7 = vcmask (!%p169_p3), 97280  }
   0x9   : > { %580 = vmatprep.subr.msk.bf16.mxu0 (!%p169_p3), %vm579_vm2, %v578_v2 }
   0xa   : > { %583 = vmatpush3.bf16.msk.msra.mxu0 (!%p169_p3), %vm579_vm2, %v578_v2 }
   0xe   : > { %s734_s12 = smov (!%p205_p4, %s639_s12), 1 }
   0xf   : > { %s553_s20 = sshll.u32 %s734_s12, 4  ;;  %s554_s25 = sshll.u32 %s734_s12, 3 }
  0x10   : > { %s209_s23 = scalar_lea.vmem %s725_s0, %s553_s20  ;;  %s218_s28 = scalar_lea.vmem %s726_s1, %s554_s25 }
  0x11   : > { %v230_v3 = vld [vmem:[%s209_s23] sm:$0xff]  ;;  %v231_v4 = vld [vmem:[%s209_s23 + $0x8] sm:$0xf]  ;;  %s228_s4 = scalar_lea.vmem %s728_s3, %s553_s20 }
  0x12   : > { %568 = vmatprep.mubr.msk.f32.mxu0 %vm234_vm3, %v230_v3  ;;  %v413_v12 = vld [vmem:[%s218_s28 + $0x4] sm:$0x3]  ;;  %v412_v13 = vld [vmem:[%s218_s28] sm:$0xf] }
  0x13   : > { %569 = vmatmul.mubr.msk.f32.vlgmr.msra.gmra.mrb[0].mxu0 %vm234_vm3, %v231_v4  ;;  %v415_v14 = vunpack.c.l.bf16 %v413_v12  ;;  %v414_v16 = vunpack.c.l.bf16 %v412_v13 }
  0xe6   : > { %v570_v5 = vpop.f32.mrb[0].mxu0 }
  0xe7   : > { %v311_v6 = vpop.f32.mrb[1].mxu0 }
  0xe8   : > { %v616_v7 = vpack.i.bf16 %v570_v5, %v311_v6  ;;  %575 = vmatprep.mubr.msk.f32.mxu1 %vm326_vm4, %v311_v6 }
  0xea   : > { %617 = vrot.lane.b32.xlu0 %v616_v7, %s650_s24 }
 0x15c   : > { %v618_v8 = vpop.permute.xlu0 %617 }
 0x15d   : > { %v620_v9 = vunpack.i.h.bf16 %v618_v8  ;;  %v619_v10 = vunpack.i.l.bf16 %v618_v8 }
 0x15f   : > { %v584_v11 = vpack.c.bf16 %v620_v9, %v619_v10 }
 0x161   : > { %586 = vmatprep.subr.msk.bf16.mxu1 %vm585_vm5, %v584_v11 }
 0x162   : > { %589 = vmatpush3.bf16.xpose.msk.msra.mxu1 %vm585_vm5, %v584_v11 }
 0x169   : > { %576 = vmatmul.mubr.msk.f32.vlgmr.msra.gmra.mrb[0].mxu1 %vm326_vm4, %v570_v5 }
 0x23c   : > { %v577_v15 = vpop.f32.mrb[0].mxu1 }
 0x23d   : > { %v411_v17 = vmul.f32 %v577_v15, %v577_v15  ;;  %v401_v18 = vpop.f32.mrb[1].mxu1 }
 0x23e   : > { %v410_v19 = vmul.f32 %v401_v18, %v401_v18 }
 0x23f   : > { %v417_v20 = vmul.f32 %v415_v14, %v411_v17 }
 0x240   : > { %v416_v21 = vmul.f32 %v414_v16, %v410_v19 }
 0x241   : > { %v423_v22 = vsel %vm422_vm6, %v417_v20, 0.0 }
 0x242   : > { %424 = vadd.xlane.f32.xlu1 %v423_v22  ;;  %v419_v23 = vsel %vm418_vm7, %v416_v21, 0.0 }
 0x243   : > { %420 = vadd.xlane.f32.xlu0 %v419_v23 }
 0x2cf   : > { %v425_v24 = vpop.xlane.xlu1 %424 }
 0x2d0   : > { %v427_v25 = vadd.f32 0.001, %v425_v24  ;;  %v421_v26 = vpop.xlane.xlu0 %420 }
 0x2d1   : > { %v426_v27 = vadd.f32 0.001, %v421_v26 }
 0x2d2   : > { %621 = vrcp.f32 %v427_v25 }
 0x2d3   : > { %623 = vrcp.f32 %v426_v27 }
 0x2dc   : > { %v622_v28 = vpop.eup %621 }
 0x2dd   : > { %v624_v29 = vpop.eup %623  ;;  %v431_v30 = vmul.f32 %v622_v28, %v417_v20 }
 0x2de   : > { %v430_v31 = vmul.f32 %v624_v29, %v416_v21 }
 0x2df   : > { %433 = vst.msk [vmem:[%s228_s4 + $0x8] sm:$0xf] %vm422_vm6, %v431_v30 }
 0x2e0   : > { %432 = vst.msk [vmem:[%s228_s4] sm:$0xff] %vm418_vm7, %v430_v31 }
 0x2e1 PF: > { %s13_s14 = sadd.s32 1, %s647_s14   ;;  %s729_s12 = smov %s643_s13 }
 0x2e2   : > { %p10_p5 = scmp.ge.s32.totalorder %s13_s14, 4   ;;  %s730_s13 = smov %s732_s15 }
 0x2e4   :  { %12 = sbr.rel (!%p10_p5) target bundleno = 2 (0x2), region = 65 }

</bundles_post_ra>
